<compile_context>
chip_gen: v5e
topology: v5e:2x2
jax: 0.10.0
libtpu: 0.0.40
codegen_flags: <defaults>
</compile_context>

<pallas_src>
import jax
import jax.numpy as jnp
from jax.experimental import pallas as pl
from jax.experimental.pallas import tpu as pltpu

TEMPERATURE = 0.07        # module hard-codes 0.07 in forward()
INV_TEMP = 1.0 / TEMPERATURE
NORM_EPS = 1e-12          # F.normalize default eps


def pool_norm_kernel(a_ref, b_ref, ea_ref, eb_ref):
    """Token-mean pool + L2 normalize one batch tile; fold 1/T into b side."""
    inv_ta = jnp.float32(1.0 / a_ref.shape[1])
    inv_tb = jnp.float32(1.0 / b_ref.shape[1])

    # Token mean with f32 accumulation (works for bf16 inputs without
    # upcasting the whole (Bt, T, D) block first).
    ea = jnp.sum(a_ref[...], axis=1, dtype=jnp.float32) * inv_ta   # (Bt, D)
    eb = jnp.sum(b_ref[...], axis=1, dtype=jnp.float32) * inv_tb   # (Bt, D)

    # F.normalize: x / max(||x||, eps)  ==  x * rsqrt(max(||x||^2, eps^2))
    eps2 = jnp.float32(NORM_EPS * NORM_EPS)
    sa = jnp.sum(ea * ea, axis=-1, keepdims=True)
    sb = jnp.sum(eb * eb, axis=-1, keepdims=True)
    ea = ea * jax.lax.rsqrt(jnp.maximum(sa, eps2))
    eb = eb * jax.lax.rsqrt(jnp.maximum(sb, eps2))

    ea_ref[...] = ea
    # Fold 1/temperature into the b operand: replaces B^2 divides on the
    # logits tile with Bt*D multiplies hidden under the (HBM-bound) pooling.
    eb_ref[...] = eb * jnp.float32(INV_TEMP)


def loss_kernel(ea_ref, ebs_ref, o_ref, acc_ref):
    """One row tile of logits.T: MXU matmul + full-row LSE + row-dot diagonal."""
    i = pl.program_id(0)
    rt = ebs_ref.shape[0]          # row-tile size
    B = ea_ref.shape[0]

    @pl.when(i == 0)
    def _init():
        acc_ref[...] = jnp.zeros_like(acc_ref)

    ea = ea_ref[...]               # (B, D)  normalized emb_a (resident)
    ebs = ebs_ref[...]             # (rt, D) normalized emb_b * (1/T)

    # logits.T row tile: (rt, B); f32 accumulate on the MXU.
    logits_t = jax.lax.dot_general(
        ebs, ea,
        dimension_numbers=(((1,), (1,)), ((), ())),
        preferred_element_type=jnp.float32,
    )

    # Numerically stable row-wise log-sum-exp over the full row.
    m = jnp.max(logits_t, axis=-1, keepdims=True)
    lse = jnp.log(jnp.sum(jnp.exp(logits_t - m), axis=-1, keepdims=True)) + m

    # Diagonal logits.T[g, g] via a row-wise dot (temperature already folded
    # into ebs) -- no (B, B) iota mask or masked reduce.
    start = pl.multiple_of(i * rt, rt)
    ea_tile = ea_ref[pl.ds(start, rt), :]                  # (rt, D)
    diag = jnp.sum(ebs * ea_tile, axis=-1, keepdims=True)  # (rt, 1)

    acc_ref[...] += jnp.sum(lse - diag, axis=(0, 1), keepdims=True)

    @pl.when(i == pl.num_programs(0) - 1)
    def _finish():
        o_ref[...] = acc_ref[...] / jnp.float32(B)


def _batch_tile(B, preferred):
    """Largest batch tile <= preferred that divides B and respects (8,128)."""
    if B <= preferred:
        return B
    t = (preferred // 8) * 8
    while t >= 8:
        if B % t == 0:
            return t
        t -= 8
    return B   # fall back to a single full block


def clip_alignment_loss(embeddings_a, embeddings_b, *, batch_tile=128, row_tile=256):
    """Pallas implementation of CLIPAlignmentLoss.forward. Returns scalar f32."""
    B, Ta, D = embeddings_a.shape
    Bb, Tb, Db = embeddings_b.shape
    assert B == Bb and D == Db, "batch / embedding dims must match"

    bt = _batch_tile(B, batch_tile)
    rt = _batch_tile(B, row_tile)

    # ---- Phase 1: batch-tiled, pipelined pooling + normalization -----------
    pooled_a, pooled_b = pl.pallas_call(
        pool_norm_kernel,
        out_shape=(jax.ShapeDtypeStruct((B, D), jnp.float32),
                   jax.ShapeDtypeStruct((B, D), jnp.float32)),
        grid_spec=pltpu.PrefetchScalarGridSpec(
            num_scalar_prefetch=0,
            grid=(B // bt,),
            in_specs=[pl.BlockSpec((bt, Ta, D), lambda i: (i, 0, 0)),
                      pl.BlockSpec((bt, Tb, D), lambda i: (i, 0, 0))],
            out_specs=[pl.BlockSpec((bt, D), lambda i: (i, 0)),
                       pl.BlockSpec((bt, D), lambda i: (i, 0))],
        ),
        compiler_params=pltpu.CompilerParams(
            dimension_semantics=("parallel",)),
    )(embeddings_a, embeddings_b)

    # ---- Phase 2: row-tiled logits.T matmul + LSE + diagonal + mean --------
    loss = pl.pallas_call(
        loss_kernel,
        out_shape=jax.ShapeDtypeStruct((1, 1), jnp.float32),
        grid_spec=pltpu.PrefetchScalarGridSpec(
            num_scalar_prefetch=0,
            grid=(B // rt,),
            in_specs=[pl.BlockSpec((B, D), lambda i: (0, 0)),    # emb_a resident
                      pl.BlockSpec((rt, D), lambda i: (i, 0))],  # emb_b*1/T tile
            out_specs=pl.BlockSpec((1, 1), lambda i: (0, 0)),
            scratch_shapes=[pltpu.VMEM((1, 1), jnp.float32)],
        ),
        compiler_params=pltpu.CompilerParams(
            dimension_semantics=("arbitrary",)),   # scalar accumulator carry
    )(pooled_a, pooled_b)

    return loss[0, 0]


def _reference_loss(embeddings_a, embeddings_b):
    """Pure-JAX reference mirroring the PyTorch forward."""
    emb_a = jnp.mean(embeddings_a, axis=1)
    emb_b = jnp.mean(embeddings_b, axis=1)
    emb_a = emb_a / jnp.maximum(jnp.linalg.norm(emb_a, axis=-1, keepdims=True), NORM_EPS)
    emb_b = emb_b / jnp.maximum(jnp.linalg.norm(emb_b, axis=-1, keepdims=True), NORM_EPS)
    logits = emb_a @ emb_b.T / TEMPERATURE
    logits_t = logits.T
    lse = jax.scipy.special.logsumexp(logits_t, axis=-1)
    diag = jnp.diagonal(logits_t)
    return jnp.mean(lse - diag)


if __name__ == "__main__":
    # Small shapes; batch_tile/row_tile chosen so both grids run multiple steps.
    B, Ta, Tb, D = 16, 8, 16, 128
    key = jax.random.PRNGKey(0)
    ka, kb = jax.random.split(key)
    embeddings_a = jax.random.normal(ka, (B, Ta, D), dtype=jnp.float32)
    embeddings_b = jax.random.normal(kb, (B, Tb, D), dtype=jnp.float32)

    loss = jax.block_until_ready(
        clip_alignment_loss(embeddings_a, embeddings_b, batch_tile=8, row_tile=8))
    ref = jax.block_until_ready(_reference_loss(embeddings_a, embeddings_b))

    assert jnp.isfinite(loss), "kernel produced non-finite loss"
    assert jnp.allclose(loss, ref, rtol=1e-3, atol=1e-3), (loss, ref)
    print("KERNEL_OK")
</pallas_src>

<mosaic_0001>
module attributes {stable_mosaic.version = 11 : i64} {
  func.func @pool_norm_kernel(%arg0: i32, %arg1: memref<8x8x128xf32, #tpu.memory_space<vmem>>, %arg2: memref<8x16x128xf32, #tpu.memory_space<vmem>>, %arg3: memref<8x128xf32, #tpu.memory_space<vmem>>, %arg4: memref<8x128xf32, #tpu.memory_space<vmem>>) attributes {dimension_semantics = [#tpu.dimension_semantics<parallel>], iteration_bounds = array<i64: 2>, scalar_prefetch = 0 : i64, scratch_operands = 0 : i64, tpu.core_type = #tpu.core_type<tc>, window_params = [{transform_indices = @transform_0, window_bounds = array<i64: 8, 8, 128>}, {transform_indices = @transform_1, window_bounds = array<i64: 8, 16, 128>}, {transform_indices = @transform_2, window_bounds = array<i64: 8, 128>}, {transform_indices = @transform_3, window_bounds = array<i64: 8, 128>}]} {
    %c0 = arith.constant 0 : index
    %c0_0 = arith.constant 0 : index
    %c0_1 = arith.constant 0 : index
    %0 = vector.load %arg1[%c0, %c0_0, %c0_1] : memref<8x8x128xf32, #tpu.memory_space<vmem>>, vector<8x8x128xf32>
    %cst = arith.constant dense<0.000000e+00> : vector<8x128xf32>
    %1 = vector.multi_reduction <add>, %0, %cst [1] : vector<8x8x128xf32> to vector<8x128xf32>
    %cst_2 = arith.constant 1.250000e-01 : f32
    %2 = vector.broadcast %cst_2 : f32 to vector<8x128xf32>
    %3 = arith.mulf %1, %2 : vector<8x128xf32>
    %c0_3 = arith.constant 0 : index
    %c0_4 = arith.constant 0 : index
    %c0_5 = arith.constant 0 : index
    %4 = vector.load %arg2[%c0_3, %c0_4, %c0_5] : memref<8x16x128xf32, #tpu.memory_space<vmem>>, vector<8x16x128xf32>
    %cst_6 = arith.constant dense<0.000000e+00> : vector<8x128xf32>
    %5 = vector.multi_reduction <add>, %4, %cst_6 [1] : vector<8x16x128xf32> to vector<8x128xf32>
    %cst_7 = arith.constant 6.250000e-02 : f32
    %6 = vector.broadcast %cst_7 : f32 to vector<8x128xf32>
    %7 = arith.mulf %5, %6 : vector<8x128xf32>
    %8 = arith.mulf %3, %3 : vector<8x128xf32>
    %cst_8 = arith.constant dense<0.000000e+00> : vector<8xf32>
    %9 = vector.multi_reduction <add>, %8, %cst_8 [1] : vector<8x128xf32> to vector<8xf32>
    %10 = vector.shape_cast %9 : vector<8xf32> to vector<8x1xf32>
    %11 = arith.mulf %7, %7 : vector<8x128xf32>
    %cst_9 = arith.constant dense<0.000000e+00> : vector<8xf32>
    %12 = vector.multi_reduction <add>, %11, %cst_9 [1] : vector<8x128xf32> to vector<8xf32>
    %13 = vector.shape_cast %12 : vector<8xf32> to vector<8x1xf32>
    %cst_10 = arith.constant 1.000000e-24 : f32
    %14 = vector.broadcast %cst_10 : f32 to vector<8x1xf32>
    %15 = arith.maximumf %10, %14 : vector<8x1xf32>
    %16 = math.rsqrt %15 : vector<8x1xf32>
    %17 = vector.broadcast %16 : vector<8x1xf32> to vector<8x128xf32>
    %18 = arith.mulf %3, %17 : vector<8x128xf32>
    %cst_11 = arith.constant 1.000000e-24 : f32
    %19 = vector.broadcast %cst_11 : f32 to vector<8x1xf32>
    %20 = arith.maximumf %13, %19 : vector<8x1xf32>
    %21 = math.rsqrt %20 : vector<8x1xf32>
    %22 = vector.broadcast %21 : vector<8x1xf32> to vector<8x128xf32>
    %23 = arith.mulf %7, %22 : vector<8x128xf32>
    %c0_12 = arith.constant 0 : index
    %c0_13 = arith.constant 0 : index
    %24 = vector.load %arg3[%c0_12, %c0_13] : memref<8x128xf32, #tpu.memory_space<vmem>>, vector<8x128xf32>
    tpu.vector_store %arg3[%c0_12, %c0_13], %18 {strides = array<i32>} : memref<8x128xf32, #tpu.memory_space<vmem>>, vector<8x128xf32>,
    %cst_14 = arith.constant 14.2857141 : f32
    %25 = vector.broadcast %cst_14 : f32 to vector<8x128xf32>
    %26 = arith.mulf %23, %25 : vector<8x128xf32>
    %c0_15 = arith.constant 0 : index
    %c0_16 = arith.constant 0 : index
    %27 = vector.load %arg4[%c0_15, %c0_16] : memref<8x128xf32, #tpu.memory_space<vmem>>, vector<8x128xf32>
    tpu.vector_store %arg4[%c0_15, %c0_16], %26 {strides = array<i32>} : memref<8x128xf32, #tpu.memory_space<vmem>>, vector<8x128xf32>,
    return
  }
  func.func @transform_0(%arg0: i32) -> (i32, i32, i32) {
    %c0_i32 = arith.constant 0 : i32
    %c0_i32_0 = arith.constant 0 : i32
    %c0_i32_1 = arith.constant 0 : i32
    return %arg0, %c0_i32, %c0_i32_0 : i32, i32, i32
  }
  func.func @transform_1(%arg0: i32) -> (i32, i32, i32) {
    %c0_i32 = arith.constant 0 : i32
    %c0_i32_0 = arith.constant 0 : i32
    %c0_i32_1 = arith.constant 0 : i32
    return %arg0, %c0_i32, %c0_i32_0 : i32, i32, i32
  }
  func.func @transform_2(%arg0: i32) -> (i32, i32) {
    %c0_i32 = arith.constant 0 : i32
    %c0_i32_0 = arith.constant 0 : i32
    return %arg0, %c0_i32 : i32, i32
  }
  func.func @transform_3(%arg0: i32) -> (i32, i32) {
    %c0_i32 = arith.constant 0 : i32
    %c0_i32_0 = arith.constant 0 : i32
    return %arg0, %c0_i32 : i32, i32
  }
}

</mosaic_0001>

<bundles_post_ra>
// kernel: tpu_custom_call.1
= control target key start
LH: loop header
LB: loop body
LE: loop exit
PB: predicated region body
PF: predicated region fallthrough
CT: control target
= control target key end

     0   :  { %s1313_s0 = inlined_call_operand.hbm [shape: f32[16,8,128], index: 0, kind: input, shape index: {}]   ;;  %s1314_s1 = inlined_call_operand.hbm [shape: f32[16,16,128], index: 1, kind: input, shape index: {}]   ;;  %s1315_s2 = inlined_call_operand.hbm [shape: f32[16,128], index: 2, kind: output, shape index: {0}]   ;;  %s1316_s3 = inlined_call_operand.hbm [shape: f32[16,128], index: 3, kind: output, shape index: {1}]  }
   0x1   :  { %1317 = sst [smem:[#allocation15_spill]] %s1313_s0 }
   0x2   :  { %9 = vsyncpa [#allocation3], 0 }
   0x3   :  { %11 = vsyncpa [#allocation3 + $0x1], 0 }
   0x4   :  { %12 = vsyncpa [#allocation6], 0 }
   0x5   :  { %14 = vsyncpa [#allocation6 + $0x1], 0 }
   0x6   :  { %15 = vsyncpa [#allocation4], 0 }
   0x7   :  { %17 = vsyncpa [#allocation4 + $0x1], 0 }
   0x8   :  { %18 = vsyncpa [#allocation9], 0 }
   0x9   :  { %20 = vsyncpa [#allocation9 + $0x1], 0  ;;  %s1009_s12 = smov 0   ;;  %s1011_s13 = smov 0  }
   0xa   :  { %s1013_s14 = smov 0   ;;  %s1015_s15 = smov 0  }
   0xb LB: > { %s1030_s16 = sadd.s32 4294967295, %s985_s15   ;;  %s737_s17 = sadd.s32 4294967294, %s985_s15   ;;  %s985_s15 = sphi %s1015_s15, %s1331_s15   ;;  %s981_s14 = sphi %s1013_s14, %s1330_s14   ;;  %s977_s13 = sphi %s1011_s13, %s1329_s13   ;;  %s973_s12 = sphi %s1009_s12, %s1328_s12  }
   0xc   : > { %s1034_s18 = sadd.s32 1, %s985_s15   ;;  %s33_s19 = sadd.s32 1, %s981_s14 }
   0xd   : > { %s30_s20 = ssub.s32 %s985_s15, %s1034_s18  ;;  %p40_p0 = scmp.ne.s32.totalorder %s981_s14, %s977_s13 }
   0xe   : > { %p31_p1 = scmp.eq.s32.totalorder %s30_s20, 0  ;;  %p41_p2 = scmp.eq.s32.totalorder %s985_s15, 0 }
   0xf   : > { %p46_p3 = scmp.ne.s32.totalorder %s977_s13, %s973_s12  ;;  %p47_p4 = scmp.eq.s32.totalorder %s1030_s16, 0 }
  0x10   : > { %s1046_s21 = scalar_select %p31_p1, %s981_s14, %s33_s19  }
  0x11   : > { %p1048_p5 = por %p41_p2, %p40_p0  ;;  %p1052_p6 = por %p47_p4, %p46_p3 }
  0x12   : > { %1318 = sst [smem:[#allocation14_spill]] %s1046_s21  ;;  %p96_p7 = scmp.eq.s32.totalorder %s1030_s16, 1 }
  0x13   : > { %p102_p8 = scmp.eq.s32.totalorder %s737_s17, 1  ;;  %p783_p10 = scmp.lt.s32.totalorder %s985_s15, 2 }
  0x14   : > { %p1059_p11 = por %p96_p7, %p40_p0  ;;  %s1068_s26 = sand.u32 1, %s981_s14  }
  0x15   : > { %p1063_p12 = por %p102_p8, %p46_p3  ;;  %s758_s27 = sshll.u32 %s985_s15, 6 }
  0x16   : > { %s740_s28 = sshll.u32 %s1068_s26, 6  ;;  %s1323_s0 = sld [smem:[#allocation15_spill]] }
  0x17   : > { %s152_s6 = scalar_lea.vmem [#allocation2], %s740_s28  ;;  %p1077_p13 = pnand %p783_p10, %p1048_p5 }
  0x18   : > { %s160_s7 = sshll.u32 %s152_s6, 4  ;;  %p747_p0 = scmp.ge.s32.totalorder %s985_s15, 1  ;;  %s161_s7 = int_to_ptr.vmem [resolvable:$true] %s160_s7 }
  0x19   : > { %p191_p1 = scmp.lt.s32.totalorder %s985_s15, 3  ;;  %s149_s9 = scalar_lea.sflag [#allocation3], %s1068_s26 }
  0x1a   : > { %p827_p3 = pneg %p1077_p13 }
  0x1c   : > { %s157_s4 = scalar_lea.hbm %s1323_s0, %s758_s27  ;;  %s830_s20 = scalar_lea.hbm %s1323_s0, 128 }
  0x1d   : > { %s158_s5 = sshll.u32 %s157_s4, 4  ;;  %s159_s5 = int_to_ptr.hbm [resolvable:$true] %s158_s5 }
  0x1e   : > { %s823_s10 = sshra.s32 %s159_s5, 4  ;;  %s824_s10 = int_to_ptr.hbm [resolvable:$true] %s823_s10 }
  0x1f   : > { %s825_s11 = scalar_lea.hbm %s824_s10, 64  ;;  %p831_p5 = scmp.lt.s32.totalorder %s824_s10, %s1323_s0 }
  0x20   : > { %p826_p2 = scmp.ne.s32.totalorder %s824_s10, %s825_s11  ;;  %p832_p8 = scmp.lt.s32.totalorder %s830_s20, %s825_s11 }
  0x22   : > { %p828_p4 = pnand %p827_p3, %p826_p2  ;;  %p833_p10 = por %p832_p8, %p831_p5 }
  0x24   : > { %p829_p7 = pneg %p828_p4 }
  0x26   : > { %p834_p9 = pnand %p833_p10, %p829_p7 }
  0x28   : > { %837 = shalt.err (!%p834_p9)
}
  0x29   : > { %s987_s28 = smov 128   ;;  %s988_s29 = smov 8  }
  0x2a   : > { %772 = dma.hbm_to_vmem [thread:$0]  (!%p1077_p13), %s159_s5, 1024, %s161_s7, %s149_s9, %s987_s28, %s987_s28, %s988_s29  }
  0x2b   : > { %p1101_p2 = pnand %p747_p0, %p191_p1  ;;  %s743_s4 = sshll.u32 %s1068_s26, 7 }
  0x2c   : > { %s760_s6 = sshll.u32 %s985_s15, 7  ;;  %s174_s20 = scalar_lea.vmem [#allocation5], %s743_s4 }
  0x2d   : > { %s180_s17 = scalar_lea.hbm %s1314_s1, %s760_s6  ;;  %s183_s22 = sshll.u32 %s174_s20, 4  ;;  %s184_s22 = int_to_ptr.vmem [resolvable:$true] %s183_s22 }
  0x2e   : > { %s181_s19 = sshll.u32 %s180_s17, 4  ;;  %s171_s27 = scalar_lea.sflag [#allocation6], %s1068_s26  ;;  %s182_s19 = int_to_ptr.hbm [resolvable:$true] %s181_s19 }
  0x2f   : > { %s853_s0 = sshra.s32 %s182_s19, 4  ;;  %s860_s21 = scalar_lea.hbm %s1314_s1, 256  ;;  %s854_s0 = int_to_ptr.hbm [resolvable:$true] %s853_s0 }
  0x30   : > { %s855_s5 = scalar_lea.hbm %s854_s0, 128  ;;  %p861_p4 = scmp.lt.s32.totalorder %s854_s0, %s1314_s1 }
  0x31   : > { %p856_p9 = scmp.ne.s32.totalorder %s854_s0, %s855_s5  ;;  %p862_p7 = scmp.lt.s32.totalorder %s860_s21, %s855_s5 }
  0x33   : > { %p858_p0 = pnand %p856_p9, %p827_p3  ;;  %p863_p5 = por %p862_p7, %p861_p4 }
  0x35   : > { %p859_p1 = pneg %p858_p0 }
  0x37   : > { %p864_p8 = pnand %p863_p5, %p859_p1 }
  0x39   : > { %867 = shalt.err (!%p864_p8)
}
  0x3a   : > { %775 = dma.hbm_to_vmem [thread:$0]  (!%p1077_p13), %s182_s19, 2048, %s184_s22, %s171_s27, %s987_s28, %s987_s28, %s988_s29  }
  0x3b   : > { %195 = sbr.rel (%p1101_p2) target bundleno = 265 (0x109), region = 28  ;;  %s1125_s26 = sand.u32 (!%p1101_p2), 1, %s977_s13  }
  0x3c   : > { %s748_s4 = sshll.u32 (!%p1101_p2), %s1125_s26, 6  ;;  %s198_s11 = scalar_lea.sflag (!%p1101_p2), [#allocation3], %s1125_s26 }
  0x3d   : > { %s1129_s17 = scalar_lea.vmem (!%p1101_p2), [#allocation2], %s748_s4 }
  0x40   : > { %956 = dma.done.wait (%p1052_p6), %s198_s11, 1024  }
  0x41   : > { %958 = vsyncadd (%p1052_p6), %s198_s11, 4294966272  ;;  %s749_s0 = sshll.u32 %s1125_s26, 7  ;;  %s208_s21 = scalar_lea.sflag [#allocation6], %s1125_s26 }
  0x42   : > { %s211_s8 = scalar_lea.vmem [#allocation5], %s749_s0 }
  0x43   : > { %960 = dma.done.wait (%p1052_p6), %s208_s21, 2048  }
  0x44   : > { %962 = vsyncadd (%p1052_p6), %s208_s21, 4294965248  ;;  %v311_v0 = vld [vmem:[%s211_s8] sm:$0xff]  ;;  %v312_v1 = vld [vmem:[%s211_s8 + $0x8] sm:$0xff]  ;;  %vm407_vm0 = vcmask 1041409   ;;  %vm409_vm1 = vcmask 1042434   ;;  %vm411_vm2 = vcmask 1043459  }
  0x45   : > { %v313_v2 = vld [vmem:[%s211_s8 + $0x10] sm:$0xff]  ;;  %v314_v3 = vld [vmem:[%s211_s8 + $0x18] sm:$0xff]  ;;  %v315_v4 = vld [vmem:[%s211_s8 + $0x20] sm:$0xff]  ;;  %v327_v6 = vadd.f32 %v312_v1, %v311_v0  ;;  %vm413_vm3 = vcmask 1044484   ;;  %vm415_vm4 = vcmask 1045509   ;;  %vm417_vm5 = vcmask 1046534  }
  0x46   : > { %v316_v5 = vld [vmem:[%s211_s8 + $0x28] sm:$0xff]  ;;  %v317_v7 = vld [vmem:[%s211_s8 + $0x30] sm:$0xff]  ;;  %v318_v8 = vld [vmem:[%s211_s8 + $0x38] sm:$0xff]  ;;  %v334_v10 = vadd.f32 %v314_v3, %v313_v2  ;;  %vm419_vm6 = vcmask 1047559   ;;  %s754_s23 = sshll.u32 %s1030_s16, 3  ;;  %s750_s28 = sshll.u32 %s1125_s26, 3 }
  0x47   : > { %v319_v9 = vld [vmem:[%s211_s8 + $0x40] sm:$0xff]  ;;  %v341_v11 = vadd.f32 %v316_v5, %v315_v4  ;;  %v320_v12 = vld [vmem:[%s211_s8 + $0x48] sm:$0xff]  ;;  %v321_v13 = vld [vmem:[%s211_s8 + $0x50] sm:$0xff]  ;;  %v328_v15 = vrot.slane %v327_v6, 4  ;;  %v348_v16 = vadd.f32 %v318_v8, %v317_v7  ;;  %s606_s19 = scalar_lea.hbm %s1316_s3, %s754_s23  ;;  %s244_s20 = scalar_lea.vmem [#allocation8], %s750_s28 }
  0x48   : > { %v322_v14 = vld [vmem:[%s211_s8 + $0x58] sm:$0xff]  ;;  %v323_v17 = vld [vmem:[%s211_s8 + $0x60] sm:$0xff]  ;;  %v324_v18 = vld [vmem:[%s211_s8 + $0x68] sm:$0xff]  ;;  %v335_v20 = vrot.slane %v334_v10, 4  ;;  %v355_v22 = vadd.f32 %v320_v12, %v319_v9  ;;  %s608_s22 = sshll.u32 %s244_s20, 4  ;;  %s610_s27 = sshll.u32 %s606_s19, 4  ;;  %s609_s22 = int_to_ptr.vmem [resolvable:$true] %s608_s22  ;;  %s611_s27 = int_to_ptr.hbm [resolvable:$true] %s610_s27 }
  0x49   : > { %v325_v19 = vld [vmem:[%s211_s8 + $0x70] sm:$0xff]  ;;  %v342_v21 = vrot.slane %v341_v11, 4  ;;  %v362_v23 = vadd.f32 %v322_v14, %v321_v13  ;;  %v326_v24 = vld [vmem:[%s211_s8 + $0x78] sm:$0xff]  ;;  %v329_v25 = vadd.f32 %v328_v15, %v327_v6  ;;  %v349_v26 = vrot.slane %v348_v16, 4  ;;  %v247_v8 = vld [vmem:[%s1129_s17] sm:$0xff]  ;;  %s582_s5 = scalar_lea.sflag [#allocation9], %s1125_s26 }
  0x4a   : > { %v369_v27 = vadd.f32 %v324_v18, %v323_v17  ;;  %v336_v28 = vadd.f32 %v335_v20, %v334_v10  ;;  %v356_v30 = vrot.slane %v355_v22, 4  ;;  %v376_v35 = vadd.f32 %v326_v24, %v325_v19  ;;  %v248_v13 = vld [vmem:[%s1129_s17 + $0x8] sm:$0xff]  ;;  %s897_s7 = sshra.s32 %s611_s27, 4  ;;  %s903_s4 = scalar_lea.hbm %s1316_s3, 16  ;;  %s898_s7 = int_to_ptr.hbm [resolvable:$true] %s897_s7 }
  0x4b   : > { %v343_v29 = vadd.f32 %v342_v21, %v341_v11  ;;  %v363_v31 = vrot.slane %v362_v23, 4  ;;  %v330_v32 = vrot.slane %v329_v25, 2  ;;  %v350_v33 = vadd.f32 %v349_v26, %v348_v16  ;;  %v249_v21 = vld [vmem:[%s1129_s17 + $0x10] sm:$0xff]  ;;  %s899_s9 = scalar_lea.hbm %s898_s7, 8  ;;  %p904_p10 = scmp.lt.s32.totalorder %s898_s7, %s1316_s3 }
  0x4c   : > { %v370_v34 = vrot.slane %v369_v27, 4  ;;  %v337_v36 = vrot.slane %v336_v28, 2  ;;  %v357_v38 = vadd.f32 %v356_v30, %v355_v22  ;;  %v377_v43 = vrot.slane %v376_v35, 4  ;;  %v250_v22 = vld [vmem:[%s1129_s17 + $0x18] sm:$0xff]  ;;  %p900_p6 = scmp.ne.s32.totalorder %s898_s7, %s899_s9  ;;  %p905_p2 = scmp.lt.s32.totalorder %s903_s4, %s899_s9 }
  0x4d   : > { %v344_v37 = vrot.slane %v343_v29, 2  ;;  %v364_v39 = vadd.f32 %v363_v31, %v362_v23  ;;  %v331_v40 = vadd.f32 %v330_v32, %v329_v25  ;;  %v351_v41 = vrot.slane %v350_v33, 2 }
  0x4e   : > { %v371_v42 = vadd.f32 %v370_v34, %v369_v27  ;;  %v338_v44 = vadd.f32 %v337_v36, %v336_v28  ;;  %v358_v46 = vrot.slane %v357_v38, 2  ;;  %v378_v51 = vadd.f32 %v377_v43, %v376_v35  ;;  %v251_v27 = vld [vmem:[%s1129_s17 + $0x20] sm:$0xff]  ;;  %v252_v34 = vld [vmem:[%s1129_s17 + $0x28] sm:$0xff]  ;;  %v253_v43 = vld [vmem:[%s1129_s17 + $0x30] sm:$0xff]  ;;  %p901_p13 = pnand %p900_p6, %p1059_p11  ;;  %p906_p9 = por %p905_p2, %p904_p10 }
  0x4f   : > { %v345_v45 = vadd.f32 %v344_v37, %v343_v29  ;;  %v365_v47 = vrot.slane %v364_v39, 2  ;;  %v332_v48 = vrot.slane %v331_v40, 1  ;;  %v352_v49 = vadd.f32 %v351_v41, %v350_v33 }
  0x50   : > { %v372_v50 = vrot.slane %v371_v42, 2  ;;  %v339_v52 = vrot.slane %v338_v44, 1  ;;  %v359_v54 = vadd.f32 %v358_v46, %v357_v38  ;;  %v379_v59 = vrot.slane %v378_v51, 2  ;;  %p902_p3 = pneg %p901_p13 }
  0x51   : > { %v346_v53 = vrot.slane %v345_v45, 1  ;;  %v366_v55 = vadd.f32 %v365_v47, %v364_v39  ;;  %v333_v56 = vadd.f32 %v332_v48, %v331_v40  ;;  %v353_v57 = vrot.slane %v352_v49, 1  ;;  %v254_v48 = vld [vmem:[%s1129_s17 + $0x38] sm:$0xff] }
  0x52   : > { %v373_v58 = vadd.f32 %v372_v50, %v371_v42  ;;  %v340_v60 = vadd.f32 %v339_v52, %v338_v44  ;;  %v360_v62 = vrot.slane %v359_v54, 1  ;;  %v380_v2 = vadd.f32 %v379_v59, %v378_v51  ;;  %p907_p0 = pnand %p906_p9, %p902_p3 }
  0x53   : > { %v347_v61 = vadd.f32 %v346_v53, %v345_v45  ;;  %v367_v63 = vrot.slane %v366_v55, 1  ;;  %v354_v0 = vadd.f32 %v353_v57, %v352_v49  ;;  %v1141_v3 = vmul.f32 0.0625, %v333_v56 }
  0x54   : > { %v374_v1 = vrot.slane %v373_v58, 1  ;;  %v361_v4 = vadd.f32 %v360_v62, %v359_v54  ;;  %v1143_v6 = vmul.f32 0.0625, %v340_v60  ;;  %v381_v10 = vrot.slane %v380_v2, 1 }
  0x55   : > { %v368_v5 = vadd.f32 %v367_v63, %v366_v55  ;;  %v1145_v7 = vmul.f32 0.0625, %v347_v61  ;;  %v1148_v11 = vmul.f32 0.0625, %v354_v0  ;;  %v424_v12 = vmul.f32 %v1141_v3, %v1141_v3 }
  0x56   : > { %v375_v9 = vadd.f32 %v374_v1, %v373_v58  ;;  %v1153_v14 = vmul.f32 0.0625, %v361_v4  ;;  %v425_v16 = vmul.f32 %v1143_v6, %v1143_v6  ;;  %v382_v18 = vadd.f32 %v381_v10, %v380_v2 }
  0x57   : > { %v1155_v15 = vmul.f32 0.0625, %v368_v5  ;;  %v426_v17 = vmul.f32 %v1145_v7, %v1145_v7  ;;  %v427_v20 = vmul.f32 %v1148_v11, %v1148_v11  ;;  %v255_v23 = vrot.slane %v247_v8, 4 }
  0x58   : > { %v1161_v19 = vmul.f32 0.0625, %v375_v9  ;;  %v428_v24 = vmul.f32 %v1153_v14, %v1153_v14  ;;  %v440_v26 = vsel %vm407_vm0, %v425_v16, %v424_v12  ;;  %v261_v28 = vrot.slane %v248_v13, 4 }
  0x59   : > { %v429_v25 = vmul.f32 %v1155_v15, %v1155_v15  ;;  %v1173_v29 = vmul.f32 0.0625, %v382_v18  ;;  %v441_v31 = vsel %vm409_vm1, %v426_v17, %v440_v26  ;;  %v256_v32 = vadd.f32 %v255_v23, %v247_v8 }
  0x5a   : > { %v430_v30 = vmul.f32 %v1161_v19, %v1161_v19  ;;  %v442_v33 = vsel %vm411_vm2, %v427_v20, %v441_v31  ;;  %v262_v35 = vadd.f32 %v261_v28, %v248_v13  ;;  %v267_v36 = vrot.slane %v249_v21, 4 }
  0x5b   : > { %v273_v37 = vrot.slane %v250_v22, 4  ;;  %v431_v38 = vmul.f32 %v1173_v29, %v1173_v29  ;;  %v443_v39 = vsel %vm413_vm3, %v428_v24, %v442_v33  ;;  %v257_v40 = vrot.slane %v256_v32, 2 }
  0x5c   : > { %v279_v41 = vrot.slane %v251_v27, 4  ;;  %v444_v42 = vsel %vm415_vm4, %v429_v25, %v443_v39  ;;  %v263_v44 = vrot.slane %v262_v35, 2  ;;  %v268_v45 = vadd.f32 %v267_v36, %v249_v21 }
  0x5d   : > { %v274_v46 = vadd.f32 %v273_v37, %v250_v22  ;;  %v445_v47 = vsel %vm417_vm5, %v430_v30, %v444_v42  ;;  %v258_v49 = vadd.f32 %v257_v40, %v256_v32  ;;  %v285_v51 = vrot.slane %v252_v34, 4 }
  0x5e   : > { %v280_v50 = vadd.f32 %v279_v41, %v251_v27  ;;  %v446_v52 = vsel %vm419_vm6, %v431_v38, %v445_v47  ;;  %v264_v53 = vadd.f32 %v263_v44, %v262_v35  ;;  %v269_v54 = vrot.slane %v268_v45, 2 }
  0x5f   : > { %v275_v55 = vrot.slane %v274_v46, 2  ;;  %448 = vadd.xlane.f32.xlu0 %v446_v52  ;;  %v259_v56 = vrot.slane %v258_v49, 1  ;;  %v286_v58 = vadd.f32 %v285_v51, %v252_v34  ;;  %v291_v59 = vrot.slane %v253_v43, 4 }
  0x60   : > { %v281_v57 = vrot.slane %v280_v50, 2  ;;  %v265_v60 = vrot.slane %v264_v53, 1  ;;  %v270_v61 = vadd.f32 %v269_v54, %v268_v45  ;;  %v297_v63 = vrot.slane %v254_v48, 4 }
  0x61   : > { %v276_v62 = vadd.f32 %v275_v55, %v274_v46  ;;  %v260_v0 = vadd.f32 %v259_v56, %v258_v49  ;;  %v287_v2 = vrot.slane %v286_v58, 2  ;;  %v292_v4 = vadd.f32 %v291_v59, %v253_v43 }
  0x62   : > { %v282_v1 = vadd.f32 %v281_v57, %v280_v50  ;;  %v266_v5 = vadd.f32 %v265_v60, %v264_v53  ;;  %v271_v8 = vrot.slane %v270_v61, 1  ;;  %v298_v10 = vadd.f32 %v297_v63, %v254_v48 }
  0x63   : > { %v277_v9 = vrot.slane %v276_v62, 1  ;;  %v288_v13 = vadd.f32 %v287_v2, %v286_v58  ;;  %v293_v16 = vrot.slane %v292_v4, 2  ;;  %v1188_v17 = vmul.f32 0.125, %v260_v0 }
  0x64   : > { %v283_v12 = vrot.slane %v282_v1, 1  ;;  %v272_v18 = vadd.f32 %v271_v8, %v270_v61  ;;  %v299_v21 = vrot.slane %v298_v10, 2  ;;  %v1190_v22 = vmul.f32 0.125, %v266_v5 }
  0x65   : > { %v278_v20 = vadd.f32 %v277_v9, %v276_v62  ;;  %v289_v24 = vrot.slane %v288_v13, 1  ;;  %v294_v25 = vadd.f32 %v293_v16, %v292_v4  ;;  %v391_v26 = vmul.f32 %v1188_v17, %v1188_v17 }
  0x66   : > { %v284_v23 = vadd.f32 %v283_v12, %v282_v1  ;;  %v300_v27 = vadd.f32 %v299_v21, %v298_v10  ;;  %v1194_v28 = vmul.f32 0.125, %v272_v18  ;;  %v392_v31 = vmul.f32 %v1190_v22, %v1190_v22 }
  0x67   : > { %v1196_v30 = vmul.f32 0.125, %v278_v20  ;;  %v290_v32 = vadd.f32 %v289_v24, %v288_v13  ;;  %v295_v33 = vrot.slane %v294_v25, 1 }
  0x68   : > { %v1200_v34 = vmul.f32 0.125, %v284_v23  ;;  %v301_v35 = vrot.slane %v300_v27, 1  ;;  %v393_v36 = vmul.f32 %v1194_v28, %v1194_v28  ;;  %v408_v38 = vsel %vm407_vm0, %v392_v31, %v391_v26 }
  0x69   : > { %v394_v37 = vmul.f32 %v1196_v30, %v1196_v30  ;;  %v296_v39 = vadd.f32 %v295_v33, %v294_v25  ;;  %v1207_v40 = vmul.f32 0.125, %v290_v32 }
  0x6a   : > { %v395_v41 = vmul.f32 %v1200_v34, %v1200_v34  ;;  %v302_v42 = vadd.f32 %v301_v35, %v300_v27  ;;  %v410_v43 = vsel %vm409_vm1, %v393_v36, %v408_v38 }
  0x6b   : > { %v1212_v44 = vmul.f32 0.125, %v296_v39  ;;  %v396_v45 = vmul.f32 %v1207_v40, %v1207_v40  ;;  %v412_v46 = vsel %vm411_vm2, %v394_v37, %v410_v43 }
  0x6c   : > { %v1217_v47 = vmul.f32 0.125, %v302_v42  ;;  %v414_v48 = vsel %vm413_vm3, %v395_v41, %v412_v46 }
  0x6d   : > { %v397_v49 = vmul.f32 %v1212_v44, %v1212_v44  ;;  %v416_v50 = vsel %vm415_vm4, %v396_v45, %v414_v48 }
  0x6e   : > { %v398_v51 = vmul.f32 %v1217_v47, %v1217_v47 }
  0x6f   : > { %v418_v52 = vsel %vm417_vm5, %v397_v49, %v416_v50 }
  0x70   : > { %v420_v53 = vsel %vm419_vm6, %v398_v51, %v418_v52 }
  0x71   : > { %422 = vadd.xlane.f32.xlu0 %v420_v53 }
  0xd2   : > { %v449_v54 = vpop.xlane.xlu0 %448 }
  0xd3   : > { %v485_v55 = vmax.f32 %v449_v54, 1e-24 }
  0xd5   : > { %819 = vrsqrt.f32 %v485_v55  ;;  %vm492_vm8 = vweird.f32 %v485_v55 }
  0xdb   : > { %v820_v56 = vpop.eup %819 }
  0xdc   : > { %v487_v57 = vmul.f32 %v820_v56, %v485_v55  ;;  %vm493_vm7 = vweird.f32 %v820_v56 }
  0xdd   : > { %vm494_vm9 = vmor %vm492_vm8, %vm493_vm7 }
  0xde   : > { %v488_v58 = vmul.f32 %v820_v56, %v487_v57 }
  0xe0   : > { %v489_v59 = vmul.f32 0.5, %v488_v58 }
  0xe2   : > { %v490_v60 = vsub.f32 1.5, %v489_v59 }
  0xe4   : > { %v491_v61 = vmul.f32 %v820_v56, %v490_v60  ;;  %v423_v62 = vpop.xlane.xlu0 %422 }
  0xe5   : > { %v450_v63 = vmax.f32 %v423_v62, 1e-24 }
  0xe6   : > { %v495_v0 = vsel %vm494_vm9, %v820_v56, %v491_v61 }
  0xe7   : > { %v497_v1 = vrot.slane %v495_v0, 1  ;;  %v498_v2 = vrot.slane %v495_v0, 2  ;;  %v499_v4 = vrot.slane %v495_v0, 3  ;;  %821 = vrsqrt.f32 %v450_v63 }
  0xe8   : > { %v500_v5 = vrot.slane %v495_v0, 4  ;;  %v501_v8 = vrot.slane %v495_v0, 5  ;;  %v512_v9 = vmul.f32 %v495_v0, %v1141_v3  ;;  %v502_v12 = vrot.slane %v495_v0, 6 }
  0xe9   : > { %v513_v10 = vmul.f32 %v497_v1, %v1143_v6  ;;  %v503_v13 = vrot.slane %v495_v0, 7  ;;  %v514_v16 = vmul.f32 %v498_v2, %v1145_v7  ;;  %v515_v18 = vmul.f32 %v499_v4, %v1148_v11 }
  0xea   : > { %v516_v20 = vmul.f32 %v500_v5, %v1153_v14  ;;  %v517_v21 = vmul.f32 %v501_v8, %v1155_v15  ;;  %v518_v23 = vmul.f32 %v502_v12, %v1161_v19  ;;  %v544_v7 = vmul.f32 14.285714, %v512_v9 }
  0xeb   : > { %v545_v24 = vmul.f32 14.285714, %v513_v10  ;;  %v519_v25 = vmul.f32 %v503_v13, %v1173_v29  ;;  %v546_v3 = vmul.f32 14.285714, %v514_v16  ;;  %v547_v26 = vmul.f32 14.285714, %v515_v18 }
  0xec   : > { %v548_v6 = vmul.f32 14.285714, %v516_v20  ;;  %v549_v31 = vmul.f32 14.285714, %v517_v21  ;;  %v550_v33 = vmul.f32 14.285714, %v518_v23  ;;  %vm457_vm11 = vweird.f32 %v450_v63 }
  0xed   : > { %v822_v27 = vpop.eup %821  ;;  %v560_v11 = vrot.slane %v545_v24, 7  ;;  %v562_v32 = vrot.slane %v546_v3, 6  ;;  %v551_v15 = vmul.f32 14.285714, %v519_v25  ;;  %v564_v29 = vrot.slane %v547_v26, 5 }
  0xee   : > { %v452_v14 = vmul.f32 %v822_v27, %v450_v63  ;;  %v566_v37 = vrot.slane %v548_v6, 4  ;;  %v568_v39 = vrot.slane %v549_v31, 3  ;;  %v570_v43 = vrot.slane %v550_v33, 2 }
  0xef   : > { %v561_v19 = vsel %vm407_vm0, %v560_v11, %v544_v7  ;;  %v572_v46 = vrot.slane %v551_v15, 1  ;;  %vm458_vm10 = vweird.f32 %v822_v27 }
  0xf0   : > { %v453_v35 = vmul.f32 %v822_v27, %v452_v14  ;;  %v563_v36 = vsel %vm409_vm1, %v562_v32, %v561_v19  ;;  %vm459_vm12 = vmor %vm457_vm11, %vm458_vm10 }
  0xf1   : > { %v565_v38 = vsel %vm411_vm2, %v564_v29, %v563_v36 }
  0xf2   : > { %v454_v41 = vmul.f32 0.5, %v453_v35  ;;  %v567_v42 = vsel %vm413_vm3, %v566_v37, %v565_v38 }
  0xf3   : > { %v569_v45 = vsel %vm415_vm4, %v568_v39, %v567_v42 }
  0xf4   : > { %v455_v48 = vsub.f32 1.5, %v454_v41  ;;  %v571_v49 = vsel %vm417_vm5, %v570_v43, %v569_v45 }
  0xf5   : > { %v573_v50 = vsel %vm419_vm6, %v572_v46, %v571_v49 }
  0xf6   : > { %v456_v51 = vmul.f32 %v822_v27, %v455_v48  ;;  %575 = vst [vmem:[%s244_s20] sm:$0xff] %v573_v50 }
  0xf7   : > { %910 = shalt.err (!%p907_p0)
}
  0xf8   : > { %766 = dma.vmem_to_hbm [thread:$0]  (%p1059_p11), %s609_s22, 128, %s611_s27, %s582_s5   ;;  %v460_v52 = vsel %vm459_vm12, %v822_v27, %v456_v51 }
  0xf9   : > { %v462_v53 = vrot.slane %v460_v52, 1  ;;  %v463_v54 = vrot.slane %v460_v52, 2  ;;  %v464_v55 = vrot.slane %v460_v52, 3  ;;  %v465_v56 = vrot.slane %v460_v52, 4  ;;  %s592_s8 = scalar_lea.hbm %s1315_s2, %s754_s23  ;;  %s237_s29 = scalar_lea.vmem [#allocation7], %s750_s28 }
  0xfa   : > { %v466_v57 = vrot.slane %v460_v52, 5  ;;  %v467_v58 = vrot.slane %v460_v52, 6  ;;  %v468_v60 = vrot.slane %v460_v52, 7  ;;  %v477_v0 = vmul.f32 %v460_v52, %v1188_v17  ;;  %s594_s30 = sshll.u32 %s237_s29, 4  ;;  %s596_s16 = sshll.u32 %s592_s8, 4  ;;  %s595_s30 = int_to_ptr.vmem [resolvable:$true] %s594_s30  ;;  %s597_s16 = int_to_ptr.hbm [resolvable:$true] %s596_s16 }
  0xfb   : > { %v478_v59 = vmul.f32 %v462_v53, %v1190_v22  ;;  %v479_v61 = vmul.f32 %v463_v54, %v1194_v28  ;;  %v480_v62 = vmul.f32 %v464_v55, %v1196_v30  ;;  %v481_v63 = vmul.f32 %v465_v56, %v1200_v34  ;;  %s577_s23 = scalar_lea.sflag [#allocation4], %s1125_s26  ;;  %s925_s19 = sshra.s32 %s597_s16, 4  ;;  %s926_s19 = int_to_ptr.hbm [resolvable:$true] %s925_s19 }
  0xfc   : > { %v482_v1 = vmul.f32 %v466_v57, %v1207_v40  ;;  %v483_v5 = vmul.f32 %v467_v58, %v1212_v44  ;;  %v484_v22 = vmul.f32 %v468_v60, %v1217_v47  ;;  %s927_s28 = scalar_lea.hbm %s926_s19, 8  ;;  %s931_s27 = scalar_lea.hbm %s1315_s2, 16 }
  0xfd   : > { %v528_v2 = vrot.slane %v478_v59, 7  ;;  %v530_v4 = vrot.slane %v479_v61, 6  ;;  %v532_v30 = vrot.slane %v480_v62, 5  ;;  %v534_v17 = vrot.slane %v481_v63, 4  ;;  %p928_p1 = scmp.ne.s32.totalorder %s926_s19, %s927_s28  ;;  %p932_p5 = scmp.lt.s32.totalorder %s926_s19, %s1315_s2 }
  0xfe   : > { %v536_v8 = vrot.slane %v482_v1, 3  ;;  %v538_v9 = vrot.slane %v483_v5, 2  ;;  %v540_v10 = vrot.slane %v484_v22, 1  ;;  %p933_p8 = scmp.lt.s32.totalorder %s931_s27, %s927_s28 }
  0xff   : > { %v529_v28 = vsel %vm407_vm0, %v528_v2, %v477_v0  ;;  %p929_p4 = pnand %p928_p1, %p1059_p11 }
 0x100   : > { %v531_v34 = vsel %vm409_vm1, %v530_v4, %v529_v28  ;;  %p934_p6 = por %p933_p8, %p932_p5 }
 0x101   : > { %v533_v40 = vsel %vm411_vm2, %v532_v30, %v531_v34  ;;  %p930_p7 = pneg %p929_p4 }
 0x102   : > { %v535_v44 = vsel %vm413_vm3, %v534_v17, %v533_v40 }
 0x103   : > { %v537_v47 = vsel %vm415_vm4, %v536_v8, %v535_v44  ;;  %p935_p13 = pnand %p934_p6, %p930_p7 }
 0x104   : > { %v539_v12 = vsel %vm417_vm5, %v538_v9, %v537_v47 }
 0x105   : > { %v541_v13 = vsel %vm419_vm6, %v540_v10, %v539_v12 }
 0x106   : > { %543 = vst [vmem:[%s237_s29] sm:$0xff] %v541_v13 }
 0x107   : > { %938 = shalt.err (!%p935_p13)
}
 0x108   : > { %765 = dma.vmem_to_hbm [thread:$0]  (%p1059_p11), %s595_s30, 128, %s597_s16, %s577_s23  }
 0x109 PF: > { %s622_s26 = sand.u32 1, %s973_s12   ;;  %p1326_p3 = scmp.ge.s32.totalorder %s985_s15, 2 }
 0x10a   : > { %s623_s9 = scalar_lea.sflag [#allocation4], %s622_s26 }
 0x10b   : > { %p777_p10 = pnand %p1326_p3, %p1063_p12 }
 0x10d   : > { %p778_p2 = pneg %p777_p10 }
 0x10f   : > { %964 = dma.done.wait (%p778_p2), %s623_s9, 128  }
 0x110   : > { %966 = vsyncadd (%p778_p2), %s623_s9, 4294967168  ;;  %s633_s10 = scalar_lea.sflag [#allocation9], %s622_s26 }
 0x111   : > { %968 = dma.done.wait (%p778_p2), %s633_s10, 128  }
 0x112   : > { %970 = vsyncadd (%p778_p2), %s633_s10, 4294967168  ;;  %s1327_s24 = sld [smem:[#allocation14_spill]]  ;;  %p23_p11 = scmp.ge.s32.totalorder %s1034_s18, 4  }
 0x113   : > { %s1328_s12 = smov %s977_s13  ;;  %s1329_s13 = smov %s981_s14 }
 0x114   : > { %s1331_s15 = smov %s1034_s18  ;;  %25 = sbr.rel (!%p23_p11) target bundleno = 11 (0xb), region = 103 }
 0x118   : > { %s1330_s14 = smov %s1327_s24 }
 0x119   :  { %639 = vsyncpa [#allocation3], 1 }
 0x11a   :  { %641 = vsyncpa [#allocation3 + $0x1], 1 }
 0x11b   :  { %642 = vsyncpa [#allocation6], 1 }
 0x11c   :  { %644 = vsyncpa [#allocation6 + $0x1], 1 }
 0x11d   :  { %645 = vsyncpa [#allocation4], 1 }
 0x11e   :  { %647 = vsyncpa [#allocation4 + $0x1], 1 }
 0x11f   :  { %648 = vsyncpa [#allocation9], 1 }
 0x120   :  { %650 = vsyncpa [#allocation9 + $0x1], 1 }

</bundles_post_ra>
